<compile_context>
chip_gen: v7x
topology: tpu7x:2x2x1
jax: 0.10.0
libtpu: 0.0.40
codegen_flags: <defaults>
</compile_context>

<pallas_src>
import functools

import jax
import jax.numpy as jnp
from jax.experimental import pallas as pl
from jax.experimental.pallas import tpu as pltpu

EPS = 1e-6

# Tile targets: 256-aligned for the v6e/v7x 256x256 MXU (also multiples of 128
# for v5e); small enough that double-buffered tiles stay well inside v7x's
# 64 MiB VMEM at realistic H/V.
_TM, _TN, _TK = 256, 256, 512       # generic linear
_TN_UNEMBED = 512                   # vocab tile of the unembed matmul
_TROWS = 256                        # row tile of the elementwise kernels


def _pick_tile(dim, target, base):
    """Largest legal tile <= target that divides dim (or the full dim)."""
    if dim <= target:
        return dim                      # full extent is always legal
    t = (target // base) * base
    while t >= base:
        if dim % t == 0:
            return t
        t -= base
    return dim                          # fall back to untiled full extent


# --------------------- tiled linear (MXU) + fused epilogues -----------------

def _matmul_kernel(*refs, activation, has_residual, return_raw):
    n_in = 3 if has_residual else 2
    a_ref, b_ref = refs[0], refs[1]
    r_ref = refs[2] if has_residual else None
    acc_ref = refs[-1]
    out_refs = refs[n_in:-1]

    @pl.when(pl.program_id(2) == 0)
    def _():
        acc_ref[...] = jnp.zeros_like(acc_ref)

    acc_ref[...] += jnp.dot(a_ref[...].astype(jnp.bfloat16), b_ref[...],
                            preferred_element_type=jnp.float32)

    @pl.when(pl.program_id(2) == pl.num_programs(2) - 1)
    def _():
        r = acc_ref[...]
        if activation is not None:
            r = activation(r)                       # fused epilogue (GeLU) on VPU/EUP
        if return_raw:
            out_refs[0][...] = r.astype(out_refs[0].dtype)
        if has_residual:
            fused = r + r_ref[...].astype(jnp.float32)
            out_refs[-1][...] = fused.astype(out_refs[-1].dtype)
        elif not return_raw:
            out_refs[0][...] = r.astype(out_refs[0].dtype)


def linear(x2d, w_bf16, *, activation=None, residual=None, return_raw=False,
           out_dtype=jnp.float32):
    """x2d: [M, K] @ w: [K, N] bf16 -> [M, N], f32 accumulation on the MXU.

    activation: fused elementwise epilogue.
    residual:   [M, N] tensor added after the epilogue (fused residual add).
    return_raw: with residual, also return the pre-residual result.
    """
    M, K = x2d.shape
    K2, N = w_bf16.shape
    assert K == K2
    tm = _pick_tile(M, _TM, 8)
    tn = _pick_tile(N, _TN, 128)
    tk = _pick_tile(K, _TK, 128)
    grid = (M // tm, N // tn, K // tk)
    has_residual = residual is not None
    kernel = functools.partial(_matmul_kernel, activation=activation,
                               has_residual=has_residual, return_raw=return_raw)

    in_specs = [pl.BlockSpec((tm, tk), lambda i, j, k: (i, k)),
                pl.BlockSpec((tk, tn), lambda i, j, k: (k, j))]
    inputs = [x2d, w_bf16]
    if has_residual:
        # index map is k-invariant -> residual tile DMA'd once per output tile
        in_specs.append(pl.BlockSpec((tm, tn), lambda i, j, k: (i, j)))
        inputs.append(residual)

    n_out = 2 if (return_raw and has_residual) else 1
    out_shape = [jax.ShapeDtypeStruct((M, N), out_dtype) for _ in range(n_out)]
    out_specs = [pl.BlockSpec((tm, tn), lambda i, j, k: (i, j)) for _ in range(n_out)]

    res = pl.pallas_call(
        kernel,
        out_shape=out_shape,
        grid_spec=pltpu.PrefetchScalarGridSpec(
            num_scalar_prefetch=0,
            grid=grid,
            in_specs=in_specs,
            out_specs=out_specs,
            scratch_shapes=[pltpu.VMEM((tm, tn), jnp.float32)]),
        compiler_params=pltpu.CompilerParams(
            dimension_semantics=("parallel", "parallel", "arbitrary")),
    )(*inputs)
    if n_out == 1:
        return res[0]
    return res[0], res[1]


# --------------- fused multi-source RMSNorm -> bf16 (one pass) --------------

def _rmsnorm_cast_kernel(*refs, num_sources):
    x_refs = refs[:num_sources]
    g = refs[num_sources][...]
    o_refs = refs[num_sources + 1:]
    for x_ref, o_ref in zip(x_refs, o_refs):
        x = x_ref[...].astype(jnp.float32)
        var = jnp.mean(x * x, axis=-1, keepdims=True)
        o_ref[...] = (x * jax.lax.rsqrt(var + EPS) * g).astype(o_ref.dtype)


def rmsnorm_cast(sources, gamma):
    """RMSNorm each [M, H] f32 source and cast to bf16 in a single fused pass."""
    NS = len(sources)
    M, H = sources[0].shape
    tr = _pick_tile(M, _TROWS, 8)
    kernel = functools.partial(_rmsnorm_cast_kernel, num_sources=NS)
    in_specs = [pl.BlockSpec((tr, H), lambda i: (i, 0)) for _ in range(NS)]
    in_specs.append(pl.BlockSpec((1, H), lambda i: (0, 0)))
    out_specs = [pl.BlockSpec((tr, H), lambda i: (i, 0)) for _ in range(NS)]
    out_shape = [jax.ShapeDtypeStruct((M, H), jnp.bfloat16) for _ in range(NS)]
    res = pl.pallas_call(
        kernel,
        out_shape=out_shape,
        grid=(M // tr,),
        in_specs=in_specs,
        out_specs=out_specs,
        compiler_params=pltpu.CompilerParams(dimension_semantics=("parallel",)),
    )(*sources, gamma.reshape(1, H).astype(jnp.float32))
    return list(res)


# ------------------- multi-source unembed (W streamed once) -----------------

def _unembed_kernel(*refs, num_sources):
    x_refs = refs[:num_sources]
    w = refs[num_sources][...]
    o_refs = refs[num_sources + 1:]
    for x_ref, o_ref in zip(x_refs, o_refs):
        o_ref[...] = jnp.dot(x_ref[...], w,
                             preferred_element_type=jnp.float32).astype(o_ref.dtype)


def unembed_multi(xn_list, w_bf16, *, out_dtype=jnp.float32):
    """logits[s] = xn_list[s] @ W for every pre-normalized bf16 source.

    Grid order (V-tiles, M-tiles): the W block index depends only on the
    outermost axis, so each streamed (H, tn) W tile is DMA'd exactly once and
    reused by every M tile of every source before moving on.
    """
    NS = len(xn_list)
    M, H = xn_list[0].shape
    V = w_bf16.shape[1]
    tm = _pick_tile(M, _TM, 8)
    tn = _pick_tile(V, _TN_UNEMBED, 128)
    grid = (V // tn, M // tm)
    kernel = functools.partial(_unembed_kernel, num_sources=NS)
    in_specs = [pl.BlockSpec((tm, H), lambda j, i: (i, 0)) for _ in range(NS)]
    in_specs.append(pl.BlockSpec((H, tn), lambda j, i: (0, j)))
    out_specs = [pl.BlockSpec((tm, tn), lambda j, i: (i, j)) for _ in range(NS)]
    out_shape = [jax.ShapeDtypeStruct((M, V), out_dtype) for _ in range(NS)]
    res = pl.pallas_call(
        kernel,
        out_shape=out_shape,
        grid=grid,
        in_specs=in_specs,
        out_specs=out_specs,
        compiler_params=pltpu.CompilerParams(
            dimension_semantics=("parallel", "parallel")),
    )(*xn_list, w_bf16)
    return list(res)


# ---------------- add_vector_after_position (+ extra add) -------------------

def _add_after_pos_kernel(x_ref, v_ref, after_ref, o_ref, *, seq_len, rows_per_tile):
    # x: [tr, H], v: [1, H], after: (1,) int32 in SMEM
    row0 = pl.program_id(0) * rows_per_tile
    rows = jax.lax.broadcasted_iota(jnp.int32, (rows_per_tile, 1), 0) + row0
    pos = rows % seq_len                                     # position id of each flat row
    # matrix + mask*v (add_vector_after_position) + v (unconditional wrapper add)
    scale = jnp.where(pos > after_ref[0], 2.0, 1.0)          # = mask + 1
    o_ref[...] = (x_ref[...].astype(jnp.float32)
                  + scale * v_ref[...].astype(jnp.float32)).astype(o_ref.dtype)


def add_vector_after_position_plus(matrix, vector, seq_len, after_id):
    """Returns matrix + (pos > after_id)*vector + vector.  matrix: [B, S, H]."""
    B, S, H = matrix.shape
    BS = B * S
    tr = _pick_tile(BS, _TROWS, 8)
    kernel = functools.partial(_add_after_pos_kernel, seq_len=seq_len,
                               rows_per_tile=tr)
    out = pl.pallas_call(
        kernel,
        out_shape=jax.ShapeDtypeStruct((BS, H), matrix.dtype),
        grid=(BS // tr,),
        in_specs=[pl.BlockSpec((tr, H), lambda i: (i, 0)),
                  pl.BlockSpec((1, H), lambda i: (0, 0)),
                  pl.BlockSpec(memory_space=pltpu.MemorySpace.SMEM)],
        out_specs=pl.BlockSpec((tr, H), lambda i: (i, 0)),
        compiler_params=pltpu.CompilerParams(dimension_semantics=("parallel",)),
    )(matrix.reshape(BS, H), vector.reshape(1, H).astype(matrix.dtype),
      jnp.array([after_id], dtype=jnp.int32))
    return out.reshape(B, S, H)


# ------------------------------ module wrapper ------------------------------

class BlockOutputWrapper:
    """JAX/Pallas port of the PyTorch BlockOutputWrapper forward pass."""

    def __init__(self, hidden, vocab, ffn, key):
        k = jax.random.split(key, 4)
        s = 0.05
        # TODO(synk): the real `block` (decoder layer), `unembed_matrix`, `norm`
        # and `tokenizer` are external checkpointed submodules; they are replaced
        # by deterministic synthetic parameters of the right shapes (weights in
        # bf16 so the kernels stream bf16 and accumulate in f32).
        self.W_attn = (jax.random.normal(k[0], (hidden, hidden), jnp.float32) * s
                       ).astype(jnp.bfloat16)
        self.W_mlp_in = (jax.random.normal(k[1], (hidden, ffn), jnp.float32) * s
                         ).astype(jnp.bfloat16)
        self.W_mlp_out = (jax.random.normal(k[2], (ffn, hidden), jnp.float32) * s
                          ).astype(jnp.bfloat16)
        self.W_unembed = (jax.random.normal(k[3], (hidden, vocab), jnp.float32) * s
                          ).astype(jnp.bfloat16)
        self.norm_gamma = jnp.ones((hidden,), jnp.float32)   # RMSNorm weight

        # wrapper state (mirrors the PyTorch module)
        self.activations = None
        self.add_activations = None
        self.after_position = None
        self.save_internal_decodings = False
        self.calc_dot_product_with = None
        self.dot_products = []
        self.block_output_unembedded = None
        self.attn_out_unembedded = None
        self.intermediate_resid_unembedded = None
        self.mlp_out_unembedded = None
        self._attn_activations = None   # AttnWrapper.activations
        self._h2d = None                # cached residual stream (attn + x)
        self._mlp_raw2d = None          # cached raw MLP output

    # --- synthetic block: 3 pallas_calls, residual adds fused in epilogues ---
    def _block(self, x):
        B, S, H = x.shape
        x2d = x.reshape(B * S, H)
        attn2d, h2d = linear(x2d, self.W_attn, residual=x2d, return_raw=True)
        self._attn_activations = attn2d.reshape(B, S, H)      # AttnWrapper capture
        # MLP intermediate emitted as bf16 (it gets cast to bf16 by the next
        # matmul anyway) to halve its HBM traffic.
        hid = linear(h2d, self.W_mlp_in, activation=jax.nn.gelu,
                     out_dtype=jnp.bfloat16)
        mlp2d, out2d = linear(hid, self.W_mlp_out, residual=h2d, return_raw=True)
        self._h2d = h2d                # == attn + x  (reused in the save path)
        self._mlp_raw2d = mlp2d        # == block.mlp(attn + x) for this block
        return (out2d.reshape(B, S, H),)

    def _finalize_dot(self, pending):
        # Host syncs (int()/float()) deferred until all device work is enqueued.
        if pending is not None:
            decoded, dp = pending
            top_token_id = int(jnp.argmax(decoded))
            # TODO(synk): tokenizer.decode(top_token_id) has no Pallas/JAX
            # equivalent; we record the raw token id instead.
            self.dot_products.append((top_token_id, float(dp)))

    # --- forward: same control flow as the PyTorch module ---
    def forward(self, x):
        output = self._block(x)
        B, S, H = output[0].shape
        # TODO(synk): PyTorch mutates self.activations in place during the
        # masked add; here it stays the pre-augmentation block output.
        self.activations = output[0]

        pending_dot = None
        if self.calc_dot_product_with is not None:
            last = self.activations[0, -1, :]                                 # [H]
            xn_last = rmsnorm_cast([last.reshape(1, H)], self.norm_gamma)[0]
            decoded = unembed_multi([xn_last], self.W_unembed)[0][0]          # [V]
            # 1xH reduction: plain jnp (a dedicated kernel is pure launch overhead).
            dp = jnp.dot(last, self.calc_dot_product_with)
            pending_dot = (decoded, dp)

        if self.add_activations is not None:
            after_id = self.after_position
            if after_id is None:
                after_id = -1          # position_ids.min() - 1 with arange(S)
            augmented = add_vector_after_position_plus(
                output[0], self.add_activations, S, after_id)
            output = (augmented,) + output[1:]

        if not self.save_internal_decodings:
            self._finalize_dot(pending_dot)
            return output

        # Four unembed passes: one fused prenorm (f32 -> bf16) pass, then one
        # matmul kernel that streams each W_unembed tile once for all sources.
        attn_output = self._attn_activations
        resid2d = self._h2d                                   # attn_output += args[0]
        mlp2d = self._mlp_raw2d                               # block.mlp(resid)
        sources = [output[0].reshape(B * S, H),
                   attn_output.reshape(B * S, H),
                   resid2d,
                   mlp2d]
        xn_list = rmsnorm_cast(sources, self.norm_gamma)
        dec = unembed_multi(xn_list, self.W_unembed)
        V = self.W_unembed.shape[1]
        self.block_output_unembedded = dec[0].reshape(B, S, V)
        self.attn_out_unembedded = dec[1].reshape(B, S, V)
        self.intermediate_resid_unembedded = dec[2].reshape(B, S, V)
        self.mlp_out_unembedded = dec[3].reshape(B, S, V)

        self._finalize_dot(pending_dot)
        return output

    def add(self, activations):
        self.add_activations = activations

    def reset(self):
        self.add_activations = None
        self.activations = None
        self._attn_activations = None
        self._h2d = None
        self._mlp_raw2d = None
        self.after_position = None
        self.calc_dot_product_with = None
        self.dot_products = []


# ---------------------------------- main ------------------------------------

if __name__ == "__main__":
    # Small shapes, but 128-aligned in H / V so the tiled BlockSpecs are legal.
    B, S, H, V, F = 2, 8, 128, 256, 256
    key = jax.random.PRNGKey(0)
    kx, kdot, kadd, kparams = jax.random.split(key, 4)

    wrapper = BlockOutputWrapper(hidden=H, vocab=V, ffn=F, key=kparams)
    x = jax.random.normal(kx, (B, S, H), jnp.float32)

    # exercise every code path of the forward
    wrapper.calc_dot_product_with = jax.random.normal(kdot, (H,), jnp.float32)
    add_vec = jax.random.normal(kadd, (H,), jnp.float32) * 0.1
    wrapper.add(add_vec)
    wrapper.save_internal_decodings = True

    out = wrapper.forward(x)

    jax.block_until_ready(out[0])
    jax.block_until_ready(wrapper.block_output_unembedded)
    jax.block_until_ready(wrapper.attn_out_unembedded)
    jax.block_until_ready(wrapper.intermediate_resid_unembedded)
    jax.block_until_ready(wrapper.mlp_out_unembedded)

    assert out[0].shape == (B, S, H)
    assert wrapper.block_output_unembedded.shape == (B, S, V)
    assert len(wrapper.dot_products) == 1

    # ---- light numerical checks against pure-jnp references ----
    # synthetic block (residual-fused matmuls, fused GeLU, bf16 intermediate)
    x2d_in = x.reshape(B * S, H)
    attn_ref = jnp.dot(x2d_in.astype(jnp.bfloat16), wrapper.W_attn,
                       preferred_element_type=jnp.float32)
    h_ref = x2d_in + attn_ref
    hid_ref = jax.nn.gelu(jnp.dot(h_ref.astype(jnp.bfloat16), wrapper.W_mlp_in,
                                  preferred_element_type=jnp.float32))
    mlp_ref = jnp.dot(hid_ref.astype(jnp.bfloat16), wrapper.W_mlp_out,
                      preferred_element_type=jnp.float32)
    block_ref = (h_ref + mlp_ref).reshape(B, S, H)
    assert jnp.allclose(wrapper.activations, block_ref, rtol=2e-2, atol=2e-2), \
        "block output mismatch"

    # masked add: out[0] == pre-augmentation activations + (mask+1)*add_vec
    mask = (jnp.arange(S) > -1).astype(jnp.float32)[None, :, None]
    ref_aug = wrapper.activations + (mask + 1.0) * add_vec[None, None, :]
    assert jnp.allclose(out[0], ref_aug, atol=1e-5), "masked-add mismatch"

    # prenorm + unembed (loose tolerance: bf16 stream, f32 accumulation)
    x2d = out[0].reshape(B * S, H)
    var = jnp.mean(x2d * x2d, axis=-1, keepdims=True)
    xn = x2d * jax.lax.rsqrt(var + EPS) * wrapper.norm_gamma
    ref_dec = jnp.dot(xn.astype(jnp.bfloat16), wrapper.W_unembed,
                      preferred_element_type=jnp.float32).reshape(B, S, V)
    assert jnp.allclose(wrapper.block_output_unembedded, ref_dec,
                        rtol=5e-2, atol=5e-2), "unembed mismatch"

    print("KERNEL_OK")
</pallas_src>

<mosaic_0001>
module attributes {stable_mosaic.version = 11 : i64} {
  func.func @_matmul_kernel(%arg0: i32, %arg1: i32, %arg2: i32, %arg3: memref<16x128xf32, #tpu.memory_space<vmem>>, %arg4: memref<128x128xbf16, #tpu.memory_space<vmem>>, %arg5: memref<16x128xf32, #tpu.memory_space<vmem>>, %arg6: memref<16x128xf32, #tpu.memory_space<vmem>>, %arg7: memref<16x128xf32, #tpu.memory_space<vmem>>, %arg8: memref<16x128xf32, #tpu.memory_space<vmem>>) attributes {dimension_semantics = [#tpu.dimension_semantics<parallel>, #tpu.dimension_semantics<parallel>, #tpu.dimension_semantics<arbitrary>], iteration_bounds = array<i64: 1, 1, 1>, scalar_prefetch = 0 : i64, scratch_operands = 1 : i64, tpu.core_type = #tpu.core_type<tc>, window_params = [{transform_indices = @transform_0, window_bounds = array<i64: 16, 128>}, {transform_indices = @transform_1, window_bounds = array<i64: 128, 128>}, {transform_indices = @transform_2, window_bounds = array<i64: 16, 128>}, {transform_indices = @transform_3, window_bounds = array<i64: 16, 128>}, {transform_indices = @transform_4, window_bounds = array<i64: 16, 128>}]} {
    %c0_i32 = arith.constant 0 : i32
    %0 = arith.cmpi eq, %arg2, %c0_i32 : i32
    %1 = arith.extui %0 : i1 to i32
    %c0_i32_0 = arith.constant 0 : i32
    %2 = arith.cmpi ne, %1, %c0_i32_0 : i32
    scf.if %2 {
      %cst_10 = arith.constant 0.000000e+00 : f32
      %13 = vector.broadcast %cst_10 : f32 to vector<16x128xf32>
      %c0_11 = arith.constant 0 : index
      %c0_12 = arith.constant 0 : index
      %14 = vector.load %arg8[%c0_11, %c0_12] : memref<16x128xf32, #tpu.memory_space<vmem>>, vector<16x128xf32>
      tpu.vector_store %arg8[%c0_11, %c0_12], %13 {strides = array<i32>} : memref<16x128xf32, #tpu.memory_space<vmem>>, vector<16x128xf32>,
    } else {
    }
    %c0 = arith.constant 0 : index
    %c0_1 = arith.constant 0 : index
    %3 = vector.load %arg8[%c0, %c0_1] : memref<16x128xf32, #tpu.memory_space<vmem>>, vector<16x128xf32>
    %c0_2 = arith.constant 0 : index
    %c0_3 = arith.constant 0 : index
    %4 = vector.load %arg3[%c0_2, %c0_3] : memref<16x128xf32, #tpu.memory_space<vmem>>, vector<16x128xf32>
    %5 = arith.truncf %4 : vector<16x128xf32> to vector<16x128xbf16>
    %c0_4 = arith.constant 0 : index
    %c0_5 = arith.constant 0 : index
    %6 = vector.load %arg4[%c0_4, %c0_5] : memref<128x128xbf16, #tpu.memory_space<vmem>>, vector<128x128xbf16>
    %cst = arith.constant dense<0.000000e+00> : vector<16x128xf32>
    %7 = tpu.matmul %5, %6, %cst {dimension_numbers = #tpu.dot_dimension_numbers<[1], [0], [0], [1], [0, 0, 1, 1], [], []>} : vector<16x128xbf16>, vector<128x128xbf16>, vector<16x128xf32> -> vector<16x128xf32>
    %8 = arith.addf %3, %7 : vector<16x128xf32>
    %c0_6 = arith.constant 0 : index
    %c0_7 = arith.constant 0 : index
    %9 = vector.load %arg8[%c0_6, %c0_7] : memref<16x128xf32, #tpu.memory_space<vmem>>, vector<16x128xf32>
    tpu.vector_store %arg8[%c0_6, %c0_7], %8 {strides = array<i32>} : memref<16x128xf32, #tpu.memory_space<vmem>>, vector<16x128xf32>,
    %c0_i32_8 = arith.constant 0 : i32
    %10 = arith.cmpi eq, %arg2, %c0_i32_8 : i32
    %11 = arith.extui %10 : i1 to i32
    %c0_i32_9 = arith.constant 0 : i32
    %12 = arith.cmpi ne, %11, %c0_i32_9 : i32
    scf.if %12 {
      %c0_10 = arith.constant 0 : index
      %c0_11 = arith.constant 0 : index
      %13 = vector.load %arg8[%c0_10, %c0_11] : memref<16x128xf32, #tpu.memory_space<vmem>>, vector<16x128xf32>
      %c0_12 = arith.constant 0 : index
      %c0_13 = arith.constant 0 : index
      %14 = vector.load %arg6[%c0_12, %c0_13] : memref<16x128xf32, #tpu.memory_space<vmem>>, vector<16x128xf32>
      tpu.vector_store %arg6[%c0_12, %c0_13], %13 {strides = array<i32>} : memref<16x128xf32, #tpu.memory_space<vmem>>, vector<16x128xf32>,
      %c0_14 = arith.constant 0 : index
      %c0_15 = arith.constant 0 : index
      %15 = vector.load %arg5[%c0_14, %c0_15] : memref<16x128xf32, #tpu.memory_space<vmem>>, vector<16x128xf32>
      %16 = arith.addf %13, %15 : vector<16x128xf32>
      %c0_16 = arith.constant 0 : index
      %c0_17 = arith.constant 0 : index
      %17 = vector.load %arg7[%c0_16, %c0_17] : memref<16x128xf32, #tpu.memory_space<vmem>>, vector<16x128xf32>
      tpu.vector_store %arg7[%c0_16, %c0_17], %16 {strides = array<i32>} : memref<16x128xf32, #tpu.memory_space<vmem>>, vector<16x128xf32>,
    } else {
    }
    return
  }
  func.func @transform_0(%arg0: i32, %arg1: i32, %arg2: i32) -> (i32, i32) {
    %c0_i32 = arith.constant 0 : i32
    return %arg0, %arg2 : i32, i32
  }
  func.func @transform_1(%arg0: i32, %arg1: i32, %arg2: i32) -> (i32, i32) {
    %c0_i32 = arith.constant 0 : i32
    return %arg2, %arg1 : i32, i32
  }
  func.func @transform_2(%arg0: i32, %arg1: i32, %arg2: i32) -> (i32, i32) {
    %c0_i32 = arith.constant 0 : i32
    return %arg0, %arg1 : i32, i32
  }
  func.func @transform_3(%arg0: i32, %arg1: i32, %arg2: i32) -> (i32, i32) {
    %c0_i32 = arith.constant 0 : i32
    return %arg0, %arg1 : i32, i32
  }
  func.func @transform_4(%arg0: i32, %arg1: i32, %arg2: i32) -> (i32, i32) {
    %c0_i32 = arith.constant 0 : i32
    return %arg0, %arg1 : i32, i32
  }
}

</mosaic_0001>

<bundles_post_ra>
// kernel: tpu_custom_call.1
= control target key start
LH: loop header
LB: loop body
LE: loop exit
PB: predicated region body
PF: predicated region fallthrough
CT: control target
= control target key end

     0   :  { %10 = vsyncpa [#allocation4], 0  ;;  %s516_s0 = inlined_call_operand.hbm [shape: f32[16,128], index: 0, kind: input, shape index: {}]   ;;  %s517_s1 = inlined_call_operand.hbm [shape: bf16[128,128], index: 1, kind: input, shape index: {}]   ;;  %s518_s2 = inlined_call_operand.hbm [shape: f32[16,128], index: 2, kind: input, shape index: {}]   ;;  %s519_s3 = inlined_call_operand.hbm [shape: f32[16,128], index: 3, kind: output, shape index: {0}]   ;;  %s520_s4 = inlined_call_operand.hbm [shape: f32[16,128], index: 4, kind: output, shape index: {1}]  }
   0x1   :  { %11 = vsyncpa [#allocation7], 0 }
   0x2   :  { %12 = vsyncpa [#allocation5], 0 }
   0x3   :  { %13 = vsyncpa [#allocation11], 0  ;;  %s401_s15 = smov [#allocation6]   ;;  %s283_s19 = scalar_lea.hbm %s517_s1, 1024 }
   0x4   :  { %s31_s16 = sshll.u32 %s401_s15, 4  ;;  %p284_p0 = scmp.ne.s32.totalorder %s517_s1, %s283_s19  ;;  %s32_s16 = int_to_ptr.vmem [resolvable:$true] %s31_s16 }
   0x5   :  { %p287_p1 = scmp.lt.u32.totalorder %s283_s19, %s517_s1 }
   0x7   :  { %p289_p2 = pnand %p287_p1, %p284_p0 }
   0x9   :  { %292 = shalt.err (!%p289_p2)
}
   0xa   :  { %s293_s24 = scalar_lea.vmem %s32_s16, 1024  ;;  %p298_p4 = scmp.lt.s32.totalorder %s32_s16, %s32_s16 }
   0xb   :  { %p294_p3 = scmp.ne.s32.totalorder %s32_s16, %s293_s24  ;;  %p299_p5 = scmp.lt.s32.totalorder %s293_s24, %s293_s24 }
   0xd   :  { %p300_p6 = por %p299_p5, %p298_p4 }
   0xf   :  { %p301_p7 = pnand %p300_p6, %p294_p3 }
  0x11   :  { %304 = shalt.err (!%p301_p7)
}
  0x12   :  { %s402_s25 = smov 64   ;;  %s403_s26 = smov 4  }
  0x13   :  { %37 = dma.hbm_to_vmem [thread:$0]  %s517_s1, 1024, %s32_s16, [#allocation7], %s402_s25, %s402_s25, %s403_s26  }
  0x14   :  { %s404_s29 = smov [#allocation3]   ;;  %s305_s7 = scalar_lea.hbm %s516_s0, 256 }
  0x15   :  { %s19_s30 = sshll.u32 %s404_s29, 4  ;;  %p306_p8 = scmp.ne.s32.totalorder %s516_s0, %s305_s7  ;;  %s20_s30 = int_to_ptr.vmem [resolvable:$true] %s19_s30 }
  0x16   :  { %p309_p9 = scmp.lt.u32.totalorder %s305_s7, %s516_s0 }
  0x18   :  { %p311_p10 = pnand %p309_p9, %p306_p8 }
  0x1a   :  { %314 = shalt.err (!%p311_p10)
}
  0x1b   :  { %s315_s12 = scalar_lea.vmem %s20_s30, 256  ;;  %p320_p12 = scmp.lt.s32.totalorder %s20_s30, %s20_s30 }
  0x1c   :  { %p316_p11 = scmp.ne.s32.totalorder %s20_s30, %s315_s12  ;;  %p321_p13 = scmp.lt.s32.totalorder %s315_s12, %s315_s12 }
  0x1e   :  { %p322_p0 = por %p321_p13, %p320_p12 }
  0x20   :  { %p323_p1 = pnand %p322_p0, %p316_p11 }
  0x22   :  { %326 = shalt.err (!%p323_p1)
}
  0x23   :  { %s405_s1 = smov 128   ;;  %s406_s13 = smov 8  }
  0x24   :  { %25 = dma.hbm_to_vmem [thread:$0]  %s516_s0, 256, %s20_s30, [#allocation4], %s405_s1, %s405_s1, %s406_s13  }
  0x25   :  { %s407_s16 = smov [#allocation8]   ;;  %s327_s20 = scalar_lea.hbm %s518_s2, 256 }
  0x26   :  { %s43_s17 = sshll.u32 %s407_s16, 4  ;;  %p328_p2 = scmp.ne.s32.totalorder %s518_s2, %s327_s20  ;;  %s44_s17 = int_to_ptr.vmem [resolvable:$true] %s43_s17 }
  0x27   :  { %p331_p3 = scmp.lt.u32.totalorder %s327_s20, %s518_s2 }
  0x29   :  { %p333_p4 = pnand %p331_p3, %p328_p2 }
  0x2b   :  { %336 = shalt.err (!%p333_p4)
}
  0x2c   :  { %s337_s25 = scalar_lea.vmem %s44_s17, 256  ;;  %p342_p6 = scmp.lt.s32.totalorder %s44_s17, %s44_s17 }
  0x2d   :  { %p338_p5 = scmp.ne.s32.totalorder %s44_s17, %s337_s25  ;;  %p343_p7 = scmp.lt.s32.totalorder %s337_s25, %s337_s25 }
  0x2f   :  { %p344_p8 = por %p343_p7, %p342_p6 }
  0x31   :  { %p345_p9 = pnand %p344_p8, %p338_p5 }
  0x33   :  { %348 = shalt.err (!%p345_p9)
}
  0x34   :  { %49 = dma.hbm_to_vmem [thread:$0]  %s518_s2, 256, %s44_s17, [#allocation7], %s405_s1, %s405_s1, %s406_s13  }
  0x35   :  { %393 = dma.done.wait [#allocation4], 256  }
  0x36   :  { %394 = vsyncadd [#allocation4], 4294967040 }
  0x37   :  { %395 = dma.done.wait [#allocation7], 1280  }
  0x38   :  { %396 = vsyncadd [#allocation7], 4294966016  ;;  %v408_v0 = vmov 0.0   ;;  %vm409_vm0 = vmmov 0   ;;  %v275_v1 = vld [vmem:[#allocation6] sm:$0xff]   ;;  %v276_v2 = vld [vmem:[#allocation6 + $0x8] sm:$0xff]  }
  0x39   :  { %244 = vmatprep.subr.bf16.mxu0 %v408_v0  ;;  %260 = vmatprep.mubr.msk.bf16.mxu0 %vm409_vm0, %v408_v0  ;;  %v277_v3 = vld [vmem:[#allocation6 + $0x10] sm:$0xff]   ;;  %v278_v4 = vld [vmem:[#allocation6 + $0x18] sm:$0xff]   ;;  %v279_v5 = vld [vmem:[#allocation6 + $0x20] sm:$0xff]   ;;  %s410_s2 = smov [#allocation9]   ;;  %s411_s28 = smov [#allocation10]  }
  0x3a   :  { %245 = vmatpush3.bf16.msra.mxu0 %v275_v1  ;;  %v280_v6 = vld [vmem:[#allocation6 + $0x28] sm:$0xff]   ;;  %v281_v7 = vld [vmem:[#allocation6 + $0x30] sm:$0xff]   ;;  %v282_v8 = vld [vmem:[#allocation6 + $0x38] sm:$0xff]   ;;  %s198_s27 = sshll.u32 %s410_s2, 4  ;;  %s210_s29 = sshll.u32 %s411_s28, 4  ;;  %s199_s27 = int_to_ptr.vmem [resolvable:$true] %s198_s27  ;;  %s479_s29 = int_to_ptr.vmem [resolvable:$true] %s210_s29 }
  0x3b   :  { %246 = vmatprep.subr.bf16.mxu0 %v408_v0  ;;  %v68_v9 = vld [vmem:[#allocation3] sm:$0xff]  ;;  %v69_v10 = vld [vmem:[#allocation3 + $0x8] sm:$0xff]  ;;  %v187_v12 = vld [vmem:[#allocation8] sm:$0xff]  ;;  %s349_s30 = scalar_lea.vmem %s199_s27, 256  ;;  %p354_p11 = scmp.lt.s32.totalorder %s199_s27, %s199_s27 }
  0x3c   :  { %v70_v11 = vpack.c.bf16 %v69_v10, %v68_v9  ;;  %v188_v14 = vld [vmem:[#allocation8 + $0x8] sm:$0xff]  ;;  %p350_p10 = scmp.ne.s32.totalorder %s199_s27, %s349_s30  ;;  %p355_p12 = scmp.lt.s32.totalorder %s349_s30, %s349_s30 }
  0x3e   :  { %247 = vmatpush3.bf16.msra.mxu0 %v276_v2  ;;  %p356_p13 = por %p355_p12, %p354_p11 }
  0x3f   :  { %248 = vmatprep.subr.bf16.mxu0 %v408_v0 }
  0x40   :  { %p357_p0 = pnand %p356_p13, %p350_p10 }
  0x42   :  { %249 = vmatpush3.bf16.msra.mxu0 %v277_v3 }
  0x43   :  { %250 = vmatprep.subr.bf16.mxu0 %v408_v0 }
  0x46   :  { %251 = vmatpush3.bf16.msra.mxu0 %v278_v4 }
  0x47   :  { %252 = vmatprep.subr.bf16.mxu0 %v408_v0 }
  0x4a   :  { %253 = vmatpush3.bf16.msra.mxu0 %v279_v5 }
  0x4b   :  { %254 = vmatprep.subr.bf16.mxu0 %v408_v0 }
  0x4e   :  { %255 = vmatpush3.bf16.msra.mxu0 %v280_v6 }
  0x4f   :  { %256 = vmatprep.subr.bf16.mxu0 %v408_v0 }
  0x52   :  { %257 = vmatpush3.bf16.msra.mxu0 %v281_v7 }
  0x53   :  { %258 = vmatprep.subr.bf16.mxu0 %v408_v0 }
  0x56   :  { %259 = vmatpush3.bf16.msra.mxu0 %v282_v8 }
  0x59   :  { %261 = vmatmul.mubr.bf16.vlgmr.msra.gmra.mrb[0].mxu0 %v70_v11 }
 0x12c   :  { %v169_v13 = vpop.f32.mrb[0].mxu0 }
 0x12d   :  { %185 = vst [vmem:[#allocation9] sm:$0xff] %v169_v13  ;;  %v189_v15 = vadd.f32 %v187_v12, %v169_v13  ;;  %v262_v16 = vpop.f32.mrb[1].mxu0 }
 0x12e   :  { %v172_v17 = vpop.f32.mrb[2].mxu0 }
 0x12f   :  { %191 = vst [vmem:[#allocation10] sm:$0xff] %v189_v15  ;;  %186 = vst [vmem:[#allocation9 + $0x8] sm:$0xff] %v172_v17  ;;  %v190_v18 = vadd.f32 %v188_v14, %v172_v17  ;;  %v263_v19 = vpop.f32.mrb[3].mxu0 }
 0x130   :  { %360 = shalt.err (!%p357_p0)
}
 0x131   :  { %s361_s7 = scalar_lea.hbm %s519_s3, 256 }
 0x132   :  { %p362_p1 = scmp.ne.s32.totalorder %s519_s3, %s361_s7  ;;  %p365_p2 = scmp.lt.u32.totalorder %s361_s7, %s519_s3 }
 0x134   :  { %p367_p3 = pnand %p365_p2, %p362_p1 }
 0x136   :  { %370 = shalt.err (!%p367_p3)
}
 0x137   :  { %204 = dma.vmem_to_hbm [thread:$0]  %s199_s27, 256, %s519_s3, [#allocation5], %s405_s1, %s405_s1, %s406_s13   ;;  %192 = vst [vmem:[#allocation10 + $0x8] sm:$0xff] %v190_v18 }
 0x138   :  { %s371_s15 = scalar_lea.vmem %s479_s29, 256  ;;  %p376_p5 = scmp.lt.s32.totalorder %s479_s29, %s479_s29 }
 0x139   :  { %p372_p4 = scmp.ne.s32.totalorder %s479_s29, %s371_s15  ;;  %p377_p6 = scmp.lt.s32.totalorder %s371_s15, %s371_s15 }
 0x13b   :  { %p378_p7 = por %p377_p6, %p376_p5 }
 0x13d   :  { %p379_p8 = pnand %p378_p7, %p372_p4 }
 0x13f   :  { %382 = shalt.err (!%p379_p8)
}
 0x140   :  { %s383_s18 = scalar_lea.hbm %s520_s4, 256 }
 0x141   :  { %p384_p9 = scmp.ne.s32.totalorder %s520_s4, %s383_s18  ;;  %p387_p10 = scmp.lt.u32.totalorder %s383_s18, %s520_s4 }
 0x143   :  { %p389_p11 = pnand %p387_p10, %p384_p9 }
 0x145   :  { %392 = shalt.err (!%p389_p11)
}
 0x146   :  { %216 = dma.vmem_to_hbm [thread:$0]  %s479_s29, 256, %s520_s4, [#allocation11], %s405_s1, %s405_s1, %s406_s13  }
 0x147   :  { %397 = dma.done.wait [#allocation5], 256  }
 0x148   :  { %398 = vsyncadd [#allocation5], 4294967040 }
 0x149   :  { %399 = dma.done.wait [#allocation11], 256  }
 0x14a   :  { %400 = vsyncadd [#allocation11], 4294967040 }
 0x14b   :  { %223 = vsyncpa [#allocation4], 1 }
 0x14c   :  { %224 = vsyncpa [#allocation7], 1 }
 0x14d   :  { %225 = vsyncpa [#allocation5], 1 }
 0x14e   :  { %226 = vsyncpa [#allocation11], 1 }

</bundles_post_ra>
